<compile_context>
chip_gen: v5e
topology: v5e:2x2
jax: 0.10.0
libtpu: 0.0.40
codegen_flags: <defaults>
</compile_context>

<pallas_src>
import functools

import jax
import jax.numpy as jnp
from jax.experimental import pallas as pl
from jax.experimental.pallas import tpu as pltpu

LANES = 128


def _pow_const(u, beta):
    """u ** beta with a trace-time-constant beta (integer betas as multiplies)."""
    b = float(beta)
    if b == 1.0:
        return u
    if b == int(b) and 1.0 < b <= 8.0:
        r = u
        for _ in range(int(b) - 1):
            r = r * u
        return r
    # TODO(synk): general non-integer beta falls back to jnp.power (exp/log path).
    return jnp.power(u, jnp.float32(b))


def _weibull_mse_kernel(yh_ref, y_ref, yd_ref, out_ref, acc_ref, *,
                        rows, blocks_per_core, block_rows, inv_eta, beta,
                        needs_mask):
    i = pl.program_id(1)

    @pl.when(i == 0)
    def _():
        acc_ref[...] = jnp.zeros_like(acc_ref)

    # In-kernel upcast (VPU) keeps HBM traffic at the inputs' native width.
    yh = yh_ref[...].astype(jnp.float32)
    yt = y_ref[...].astype(jnp.float32)
    yd = yd_ref[...].astype(jnp.float32)

    yhd = yd + yt - yh  # predicted age in days
    # cdf_hat - cdf == exp(-(yd/eta)^beta) - exp(-(yhd/eta)^beta)
    d = jnp.exp(-_pow_const(yd * inv_eta, beta)) \
        - jnp.exp(-_pow_const(yhd * inv_eta, beta))
    sq = d * d

    if needs_mask:  # trace-time flag: only emitted when the grid over-covers rows
        blk = pl.program_id(0) * blocks_per_core + i
        row0 = blk * block_rows
        row_ids = row0 + jax.lax.broadcasted_iota(jnp.int32, sq.shape, 0)
        sq = jnp.where(row_ids < rows, sq, 0.0)

    # Lane-wide partials: cheap sublane reduce per step, lane reduce deferred.
    acc_ref[...] += jnp.sum(sq, axis=0, keepdims=True)

    @pl.when(i == pl.num_programs(1) - 1)
    def _():
        out_ref[0] = acc_ref[...]


def weibull_loss_mse(y_hat, y, y_days, lambda_mod=2.0, eta=90.0, beta=2.0,
                     block_rows=2048):
    assert y_hat.shape == y.shape == y_days.shape, "inputs must share a shape"
    n = int(y_hat.size)

    flat = [a.reshape(-1) for a in (y_hat, y, y_days)]
    rows = pl.cdiv(n, LANES)
    padded = rows * LANES
    if padded != n:
        # Only the tiny (<128 element) tail is padded; zero pads give
        # y_hat_days == y_days == 0 -> cdf_hat == cdf -> 0 contribution.
        flat = [jnp.pad(a, (0, padded - n)) for a in flat]
    xs = [a.reshape(rows, LANES) for a in flat]

    # Row-block size: full array if it fits in one block, else 8-aligned.
    br = min(int(block_rows), rows)
    if br != rows and br % 8 != 0:
        br = min(max(8, (br // 8) * 8), rows)
    nblocks = pl.cdiv(rows, br)

    # Shard row blocks across both TensorCores on v7x; 1-TC chips just run the
    # parallel axis sequentially (no extra data movement).
    num_cores = 2 if nblocks >= 2 else 1
    bpc = pl.cdiv(nblocks, num_cores)
    needs_mask = (num_cores * bpc * br != rows)

    def in_map(c, i):
        # Clamp duplicated trailing blocks (odd nblocks) onto a valid block;
        # they are fully masked inside the kernel.
        return (jnp.minimum(c * bpc + i, nblocks - 1), 0)

    kernel = functools.partial(
        _weibull_mse_kernel,
        rows=rows, blocks_per_core=bpc, block_rows=br,
        inv_eta=1.0 / float(eta), beta=float(beta), needs_mask=needs_mask)

    partials = pl.pallas_call(
        kernel,
        out_shape=jax.ShapeDtypeStruct((num_cores, 1, LANES), jnp.float32),
        grid_spec=pltpu.PrefetchScalarGridSpec(
            num_scalar_prefetch=0,
            grid=(num_cores, bpc),
            in_specs=[pl.BlockSpec((br, LANES), in_map) for _ in range(3)],
            out_specs=pl.BlockSpec((1, 1, LANES), lambda c, i: (c, 0, 0)),
            scratch_shapes=[pltpu.VMEM((1, LANES), jnp.float32)],
        ),
        compiler_params=pltpu.CompilerParams(
            dimension_semantics=("parallel", "arbitrary")),
    )(*xs)

    return (jnp.float32(lambda_mod) / jnp.float32(n)) * jnp.sum(partials)


def weibull_loss_mse_ref(y_hat, y, y_days, lambda_mod=2.0, eta=90.0, beta=2.0):
    y_hat = y_hat.astype(jnp.float32)
    y = y.astype(jnp.float32)
    y_days = y_days.astype(jnp.float32)
    y_hat_days = y_days + y - y_hat   # isfinite filter is identity for finite inputs
    cdf = 1.0 - jnp.exp(-((y_days / eta) ** beta))
    cdf_hat = 1.0 - jnp.exp(-((y_hat_days / eta) ** beta))
    return lambda_mod * jnp.mean((cdf_hat - cdf) ** 2)


if __name__ == "__main__":
    key = jax.random.PRNGKey(0)
    k1, k2, k3 = jax.random.split(key, 3)

    # Small, deterministic "RUL-like" inputs: true RUL, predicted RUL, age (days).
    shape = (2, 4, 16, 16)   # 2048 elements
    y = jax.random.uniform(k1, shape, jnp.float32, 0.0, 150.0)
    y_hat = y + jax.random.uniform(k2, shape, jnp.float32, -30.0, 30.0)
    y_days = jax.random.uniform(k3, shape, jnp.float32, 0.0, 180.0)

    ref = weibull_loss_mse_ref(y_hat, y, y_days)

    # 1) Default path (single big block).
    out = weibull_loss_mse(y_hat, y, y_days)
    jax.block_until_ready(out)
    assert jnp.allclose(out, ref, rtol=5e-5, atol=1e-7), (out, ref)

    # 2) Multi-block + two-core grid path (small tiles just to exercise it).
    out2 = weibull_loss_mse(y_hat, y, y_days, block_rows=8)
    jax.block_until_ready(out2)
    assert jnp.allclose(out2, ref, rtol=5e-5, atol=1e-7), (out2, ref)

    # 3) Unaligned element count -> tail pad + partial/duplicated block masking.
    shape3 = (5, 499)        # 2495 elements, not a multiple of 128
    ks = jax.random.split(jax.random.PRNGKey(1), 3)
    y3 = jax.random.uniform(ks[0], shape3, jnp.float32, 0.0, 150.0)
    yh3 = y3 + jax.random.uniform(ks[1], shape3, jnp.float32, -30.0, 30.0)
    yd3 = jax.random.uniform(ks[2], shape3, jnp.float32, 0.0, 180.0)
    out3 = weibull_loss_mse(yh3, y3, yd3, block_rows=8)
    jax.block_until_ready(out3)
    ref3 = weibull_loss_mse_ref(yh3, y3, yd3)
    assert jnp.allclose(out3, ref3, rtol=5e-5, atol=1e-7), (out3, ref3)

    # 4) bf16 inputs stay bf16 in HBM; the kernel upcasts on the VPU.
    out4 = weibull_loss_mse(y_hat.astype(jnp.bfloat16), y.astype(jnp.bfloat16),
                            y_days.astype(jnp.bfloat16))
    jax.block_until_ready(out4)
    ref4 = weibull_loss_mse_ref(y_hat.astype(jnp.bfloat16), y.astype(jnp.bfloat16),
                                y_days.astype(jnp.bfloat16))
    assert jnp.allclose(out4, ref4, rtol=1e-4, atol=1e-6), (out4, ref4)

    print("KERNEL_OK")
</pallas_src>

<mosaic_0001>
module attributes {stable_mosaic.version = 11 : i64} {
  func.func @_weibull_mse_kernel(%arg0: i32, %arg1: i32, %arg2: memref<16x128xf32, #tpu.memory_space<vmem>>, %arg3: memref<16x128xf32, #tpu.memory_space<vmem>>, %arg4: memref<16x128xf32, #tpu.memory_space<vmem>>, %arg5: memref<1x1x128xf32, #tpu.memory_space<vmem>>, %arg6: memref<1x128xf32, #tpu.memory_space<vmem>>) attributes {dimension_semantics = [#tpu.dimension_semantics<parallel>, #tpu.dimension_semantics<arbitrary>], iteration_bounds = array<i64: 1, 1>, scalar_prefetch = 0 : i64, scratch_operands = 1 : i64, tpu.core_type = #tpu.core_type<tc>, window_params = [{transform_indices = @transform_0, window_bounds = array<i64: 16, 128>}, {transform_indices = @transform_1, window_bounds = array<i64: 16, 128>}, {transform_indices = @transform_2, window_bounds = array<i64: 16, 128>}, {transform_indices = @transform_3, window_bounds = array<i64: 1, 1, 128>}]} {
    %c0_i32 = arith.constant 0 : i32
    %0 = arith.cmpi eq, %arg1, %c0_i32 : i32
    %1 = arith.extui %0 : i1 to i32
    %c0_i32_0 = arith.constant 0 : i32
    %2 = arith.cmpi ne, %1, %c0_i32_0 : i32
    scf.if %2 {
      %cst_16 = arith.constant 0.000000e+00 : f32
      %30 = vector.broadcast %cst_16 : f32 to vector<1x128xf32>
      %c0_17 = arith.constant 0 : index
      %c0_18 = arith.constant 0 : index
      %31 = vector.load %arg6[%c0_17, %c0_18] : memref<1x128xf32, #tpu.memory_space<vmem>>, vector<1x128xf32>
      tpu.vector_store %arg6[%c0_17, %c0_18], %30 {strides = array<i32>} : memref<1x128xf32, #tpu.memory_space<vmem>>, vector<1x128xf32>,
    } else {
    }
    %c0 = arith.constant 0 : index
    %c0_1 = arith.constant 0 : index
    %3 = vector.load %arg2[%c0, %c0_1] : memref<16x128xf32, #tpu.memory_space<vmem>>, vector<16x128xf32>
    %c0_2 = arith.constant 0 : index
    %c0_3 = arith.constant 0 : index
    %4 = vector.load %arg3[%c0_2, %c0_3] : memref<16x128xf32, #tpu.memory_space<vmem>>, vector<16x128xf32>
    %c0_4 = arith.constant 0 : index
    %c0_5 = arith.constant 0 : index
    %5 = vector.load %arg4[%c0_4, %c0_5] : memref<16x128xf32, #tpu.memory_space<vmem>>, vector<16x128xf32>
    %6 = arith.addf %5, %4 : vector<16x128xf32>
    %7 = arith.subf %6, %3 : vector<16x128xf32>
    %cst = arith.constant 0.0111111114 : f32
    %8 = vector.broadcast %cst : f32 to vector<16x128xf32>
    %9 = arith.mulf %5, %8 : vector<16x128xf32>
    %10 = arith.mulf %9, %9 : vector<16x128xf32>
    %cst_6 = arith.constant 0.000000e+00 : f32
    %11 = vector.broadcast %cst_6 : f32 to vector<16x128xf32>
    %12 = arith.subf %11, %10 : vector<16x128xf32>
    %13 = math.exp %12 : vector<16x128xf32>
    %cst_7 = arith.constant 0.0111111114 : f32
    %14 = vector.broadcast %cst_7 : f32 to vector<16x128xf32>
    %15 = arith.mulf %7, %14 : vector<16x128xf32>
    %16 = arith.mulf %15, %15 : vector<16x128xf32>
    %cst_8 = arith.constant 0.000000e+00 : f32
    %17 = vector.broadcast %cst_8 : f32 to vector<16x128xf32>
    %18 = arith.subf %17, %16 : vector<16x128xf32>
    %19 = math.exp %18 : vector<16x128xf32>
    %20 = arith.subf %13, %19 : vector<16x128xf32>
    %21 = arith.mulf %20, %20 : vector<16x128xf32>
    %c0_9 = arith.constant 0 : index
    %c0_10 = arith.constant 0 : index
    %22 = vector.load %arg6[%c0_9, %c0_10] : memref<1x128xf32, #tpu.memory_space<vmem>>, vector<1x128xf32>
    %cst_11 = arith.constant dense<0.000000e+00> : vector<128xf32>
    %23 = vector.multi_reduction <add>, %21, %cst_11 [0] : vector<16x128xf32> to vector<128xf32>
    %24 = vector.shape_cast %23 : vector<128xf32> to vector<1x128xf32>
    %25 = arith.addf %22, %24 : vector<1x128xf32>
    %c0_12 = arith.constant 0 : index
    %c0_13 = arith.constant 0 : index
    %26 = vector.load %arg6[%c0_12, %c0_13] : memref<1x128xf32, #tpu.memory_space<vmem>>, vector<1x128xf32>
    tpu.vector_store %arg6[%c0_12, %c0_13], %25 {strides = array<i32>} : memref<1x128xf32, #tpu.memory_space<vmem>>, vector<1x128xf32>,
    %c0_i32_14 = arith.constant 0 : i32
    %27 = arith.cmpi eq, %arg1, %c0_i32_14 : i32
    %28 = arith.extui %27 : i1 to i32
    %c0_i32_15 = arith.constant 0 : i32
    %29 = arith.cmpi ne, %28, %c0_i32_15 : i32
    scf.if %29 {
      %c0_16 = arith.constant 0 : index
      %c0_17 = arith.constant 0 : index
      %30 = vector.load %arg6[%c0_16, %c0_17] : memref<1x128xf32, #tpu.memory_space<vmem>>, vector<1x128xf32>
      %c0_18 = arith.constant 0 : index
      %c0_19 = arith.constant 0 : index
      %c0_20 = arith.constant 0 : index
      %31 = vector.load %arg5[%c0_18, %c0_19, %c0_20] : memref<1x1x128xf32, #tpu.memory_space<vmem>>, vector<1x1x128xf32>
      %32 = vector.shape_cast %31 : vector<1x1x128xf32> to vector<1x128xf32>
      %33 = vector.shape_cast %30 : vector<1x128xf32> to vector<1x1x128xf32>
      tpu.vector_store %arg5[%c0_18, %c0_19, %c0_20], %33 {strides = array<i32>} : memref<1x1x128xf32, #tpu.memory_space<vmem>>, vector<1x1x128xf32>,
    } else {
    }
    return
  }
  func.func @transform_0(%arg0: i32, %arg1: i32) -> (i32, i32) {
    %c1_i32 = arith.constant 1 : i32
    %0 = arith.muli %arg0, %c1_i32 : i32
    %1 = arith.addi %0, %arg1 : i32
    %c0_i32 = arith.constant 0 : i32
    %2 = arith.minsi %1, %c0_i32 : i32
    %c0_i32_0 = arith.constant 0 : i32
    %c0_i32_1 = arith.constant 0 : i32
    return %2, %c0_i32_0 : i32, i32
  }
  func.func @transform_1(%arg0: i32, %arg1: i32) -> (i32, i32) {
    %c1_i32 = arith.constant 1 : i32
    %0 = arith.muli %arg0, %c1_i32 : i32
    %1 = arith.addi %0, %arg1 : i32
    %c0_i32 = arith.constant 0 : i32
    %2 = arith.minsi %1, %c0_i32 : i32
    %c0_i32_0 = arith.constant 0 : i32
    %c0_i32_1 = arith.constant 0 : i32
    return %2, %c0_i32_0 : i32, i32
  }
  func.func @transform_2(%arg0: i32, %arg1: i32) -> (i32, i32) {
    %c1_i32 = arith.constant 1 : i32
    %0 = arith.muli %arg0, %c1_i32 : i32
    %1 = arith.addi %0, %arg1 : i32
    %c0_i32 = arith.constant 0 : i32
    %2 = arith.minsi %1, %c0_i32 : i32
    %c0_i32_0 = arith.constant 0 : i32
    %c0_i32_1 = arith.constant 0 : i32
    return %2, %c0_i32_0 : i32, i32
  }
  func.func @transform_3(%arg0: i32, %arg1: i32) -> (i32, i32, i32) {
    %c0_i32 = arith.constant 0 : i32
    %c0_i32_0 = arith.constant 0 : i32
    %c0_i32_1 = arith.constant 0 : i32
    return %arg0, %c0_i32, %c0_i32_0 : i32, i32, i32
  }
}

</mosaic_0001>

<bundles_post_ra>
// kernel: tpu_custom_call.1
= control target key start
LH: loop header
LB: loop body
LE: loop exit
PB: predicated region body
PF: predicated region fallthrough
CT: control target
= control target key end

     0   :  { %8 = vsyncpa [#allocation4], 0  ;;  %s326_s0 = inlined_call_operand.hbm [shape: f32[16,128], index: 0, kind: input, shape index: {}]   ;;  %s327_s1 = inlined_call_operand.hbm [shape: f32[16,128], index: 1, kind: input, shape index: {}]   ;;  %s328_s2 = inlined_call_operand.hbm [shape: f32[16,128], index: 2, kind: input, shape index: {}]   ;;  %s329_s3 = inlined_call_operand.hbm [shape: f32[1,1,128], index: 3, kind: output, shape index: {}]  }
   0x1   :  { %9 = vsyncpa [#allocation7], 0 }
   0x2   :  { %10 = vsyncpa [#allocation5], 0  ;;  %s40_s14 = sshll.u32 %s327_s1, 4  ;;  %s287_s15 = smov [#allocation6]   ;;  %s41_s14 = int_to_ptr.hbm [resolvable:$true] %s40_s14 }
   0x3   :  { %s42_s16 = sshll.u32 %s287_s15, 4  ;;  %s21_s19 = sshll.u32 %s326_s0, 4  ;;  %s43_s16 = int_to_ptr.vmem [resolvable:$true] %s42_s16  ;;  %s22_s19 = int_to_ptr.hbm [resolvable:$true] %s21_s19 }
   0x4   :  { %s288_s20 = smov 128   ;;  %s289_s21 = smov 8  }
   0x5   :  { %48 = dma.hbm_to_vmem [thread:$0]  %s41_s14, 256, %s43_s16, [#allocation7], %s288_s20, %s288_s20, %s289_s21  }
   0x6   :  { %s290_s22 = smov [#allocation3]   ;;  %s59_s26 = sshll.u32 %s328_s2, 4  ;;  %s60_s26 = int_to_ptr.hbm [resolvable:$true] %s59_s26 }
   0x7   :  { %s23_s23 = sshll.u32 %s290_s22, 4  ;;  %s291_s1 = smov [#allocation8]   ;;  %s24_s23 = int_to_ptr.vmem [resolvable:$true] %s23_s23 }
   0x8   :  { %29 = dma.hbm_to_vmem [thread:$0]  %s22_s19, 256, %s24_s23, [#allocation4], %s288_s20, %s288_s20, %s289_s21  }
   0x9   :  { %s61_s27 = sshll.u32 %s291_s1, 4  ;;  %s62_s27 = int_to_ptr.vmem [resolvable:$true] %s61_s27 }
   0xa   :  { %67 = dma.hbm_to_vmem [thread:$0]  %s60_s26, 256, %s62_s27, [#allocation7], %s288_s20, %s288_s20, %s289_s21  }
   0xb   :  { %281 = dma.done.wait [#allocation4], 256  }
   0xc   :  { %282 = vsyncadd [#allocation4], 4294967040 }
   0xd   :  { %283 = dma.done.wait [#allocation7], 512  }
   0xe   :  { %284 = vsyncadd [#allocation7], 4294966784  ;;  %v292_v0 = vmov 0.0   ;;  %v97_v1 = vld [vmem:[#allocation3] sm:$0xff]  ;;  %v98_v2 = vld [vmem:[#allocation3 + $0x8] sm:$0xff]  ;;  %s293_s0 = smov [#allocation9]  }
   0xf   :  { %96 = vst [vmem:[#allocation2] sm:$0x1] %v292_v0  ;;  %v99_v3 = vld [vmem:[#allocation6] sm:$0xff]  ;;  %v100_v4 = vld [vmem:[#allocation6 + $0x8] sm:$0xff]  ;;  %v101_v5 = vld [vmem:[#allocation8] sm:$0xff]  ;;  %s151_s2 = sshll.u32 %s293_s0, 4  ;;  %s152_s2 = int_to_ptr.vmem [resolvable:$true] %s151_s2 }
  0x10   :  { %v102_v6 = vld [vmem:[#allocation8 + $0x8] sm:$0xff]  ;;  %v103_v7 = vadd.f32 %v101_v5, %v99_v3  ;;  %v107_v9 = vmul.f32 0.011111111, %v101_v5  ;;  %s153_s30 = sshll.u32 %s329_s3, 4  ;;  %s154_s30 = int_to_ptr.hbm [resolvable:$true] %s153_s30 }
  0x11   :  { %v104_v8 = vadd.f32 %v102_v6, %v100_v4  ;;  %v108_v10 = vmul.f32 0.011111111, %v102_v6 }
  0x12   :  { %v105_v11 = vsub.f32 %v103_v7, %v97_v1  ;;  %v109_v13 = vmul.f32 %v107_v9, %v107_v9 }
  0x13   :  { %v106_v12 = vsub.f32 %v104_v8, %v98_v2  ;;  %v110_v14 = vmul.f32 %v108_v10, %v108_v10 }
  0x14   :  { %v111_v15 = vsub.f32 0.0, %v109_v13  ;;  %v117_v17 = vmul.f32 0.011111111, %v105_v11 }
  0x15   :  { %v112_v16 = vsub.f32 0.0, %v110_v14  ;;  %v118_v18 = vmul.f32 0.011111111, %v106_v12 }
  0x16   :  { %v113_v19 = vmul.f32 1.442695, %v111_v15  ;;  %v119_v20 = vmul.f32 %v117_v17, %v117_v17  ;;  %v131_v41 = vld [vmem:[#allocation2] sm:$0x1] }
  0x17   :  { %v120_v21 = vmul.f32 %v118_v18, %v118_v18  ;;  %v115_v22 = vmul.f32 1.442695, %v112_v16 }
  0x18   :  { %v121_v23 = vsub.f32 0.0, %v119_v20  ;;  %177 = vpow2.f32 %v113_v19 }
  0x19   :  { %v122_v24 = vsub.f32 0.0, %v120_v21  ;;  %179 = vpow2.f32 %v115_v22 }
  0x1a   :  { %v123_v25 = vmul.f32 1.442695, %v121_v23 }
  0x1b   :  { %v125_v26 = vmul.f32 1.442695, %v122_v24 }
  0x1c   :  { %181 = vpow2.f32 %v123_v25 }
  0x1d   :  { %183 = vpow2.f32 %v125_v26 }
  0x1e   :  { %v178_v27 = vpop.eup %177 }
  0x1f   :  { %v180_v28 = vpop.eup %179 }
  0x22   :  { %v182_v29 = vpop.eup %181 }
  0x23   :  { %v184_v30 = vpop.eup %183  ;;  %v127_v31 = vsub.f32 %v178_v27, %v182_v29 }
  0x24   :  { %v128_v32 = vsub.f32 %v180_v28, %v184_v30 }
  0x25   :  { %v129_v33 = vmul.f32 %v127_v31, %v127_v31 }
  0x26   :  { %v130_v34 = vmul.f32 %v128_v32, %v128_v32 }
  0x28   :  { %v132_v35 = vadd.f32 %v130_v34, %v129_v33 }
  0x2a   :  { %v133_v36 = vrot.slane %v132_v35, 4 }
  0x2c   :  { %v134_v37 = vadd.f32 %v133_v36, %v132_v35 }
  0x2e   :  { %v135_v38 = vrot.slane %v134_v37, 2 }
  0x30   :  { %v136_v39 = vadd.f32 %v135_v38, %v134_v37 }
  0x32   :  { %v137_v40 = vrot.slane %v136_v39, 1 }
  0x34   :  { %v138_v42 = vadd.f32 %v137_v40, %v136_v39 }
  0x36   :  { %v139_v43 = vadd.f32 %v138_v42, %v131_v41 }
  0x38   :  { %140 = vst [vmem:[#allocation2] sm:$0x1] %v139_v43 }
  0x3f   :  { %v144_v44 = vld [vmem:[#allocation2] sm:$0x1] }
  0x40   :  { %145 = vst [vmem:[#allocation9] sm:$0x1] %v144_v44 }
  0x41   :  { %156 = dma.vmem_to_hbm [thread:$0]  %s152_s2, 16, %s154_s30, [#allocation5]  }
  0x42   :  { %285 = dma.done.wait [#allocation5], 16  }
  0x43   :  { %286 = vsyncadd [#allocation5], 4294967280 }
  0x44   :  { %161 = vsyncpa [#allocation4], 1 }
  0x45   :  { %162 = vsyncpa [#allocation7], 1 }
  0x46   :  { %163 = vsyncpa [#allocation5], 1 }

</bundles_post_ra>
